<compile_context>
chip_gen: v7x
topology: tpu7x:2x2x1
jax: 0.10.0
libtpu: 0.0.40
codegen_flags: <defaults>
</compile_context>

<pallas_src>
import jax
import jax.numpy as jnp
from jax.experimental import pallas as pl
from jax.experimental.pallas import tpu as pltpu

HIDDEN = 128
N_PAD = 128           # lane-dense padded output width
NEG_BIG = -1e30       # bias for padded softmax columns -> exp() == 0
ROW_ALIGN = 16        # batch-tile row alignment (bf16 output sublane packing)


def _round_up(x, m):
    return ((x + m - 1) // m) * m


def actor_kernel(x_ref, w1_ref, b1_ref, w2_ref, b2_ref, w3_ref, b3_ref, o_ref):
    # x tile -> bf16 for the MXU; accumulate in f32.
    x = x_ref[...].astype(jnp.bfloat16)

    # Linear1 + (Dropout1: identity in eval) + ReLU
    h1 = jnp.dot(x, w1_ref[...], preferred_element_type=jnp.float32) + b1_ref[...]
    h1 = jnp.maximum(h1, 0.0)

    # Linear2 + (Dropout2: identity in eval) + ReLU
    h2 = jnp.dot(h1.astype(jnp.bfloat16), w2_ref[...],
                 preferred_element_type=jnp.float32) + b2_ref[...]
    h2 = jnp.maximum(h2, 0.0)

    # Linear3 (N padded to 128; padded columns carry bias -1e30)
    logits = jnp.dot(h2.astype(jnp.bfloat16), w3_ref[...],
                     preferred_element_type=jnp.float32) + b3_ref[...]

    # Softmax over the (padded) last dim; padded lanes contribute exp(-huge)=0.
    m = jnp.max(logits, axis=-1, keepdims=True)
    e = jnp.exp(logits - m)
    denom = jnp.sum(e, axis=-1, keepdims=True)
    # Exact division: denom is only (TB, 1), so this is essentially free and
    # keeps every row-sum at 1.0 to f32 precision (the approx reciprocal
    # previously broke the 1e-3 normalization check).
    o_ref[...] = (e / denom).astype(o_ref.dtype)


def prepare_params(params):
    """One-time (per parameter set) prep: pad layer-3 to 128 lanes, cast weights
    to bf16.  Hoisted out of actor_forward so the per-call wrapper does no
    parameter-side XLA work."""
    w1, b1, w2, b2, w3, b3 = params
    hidden = w1.shape[1]
    action_dim = w3.shape[1]

    w3p = jnp.zeros((hidden, N_PAD), jnp.float32).at[:, :action_dim].set(w3)
    b3p = jnp.full((1, N_PAD), NEG_BIG, jnp.float32).at[:, :action_dim].set(b3)

    return (w1.astype(jnp.bfloat16), b1,
            w2.astype(jnp.bfloat16), b2,
            w3p.astype(jnp.bfloat16), b3p)


def actor_forward(x, prepared_params, action_dim, *, tb=2048):
    """Fused Actor forward (eval mode).

    x: (batch, state_dim) f32.  prepared_params: output of prepare_params().
    Returns (batch, action_dim) f32 probabilities.
    """
    w1b, b1, w2b, b2, w3b, b3p = prepared_params
    batch, state_dim = x.shape
    hidden = w1b.shape[1]

    # ---- batch tiling ------------------------------------------------------
    # Large tiles amortize the ~0.35 us fixed per-grid-step cost, but keep at
    # least 2 grid steps when the batch allows it so v7x's two TensorCores
    # both get work ("parallel" batch axis).
    tb = max(ROW_ALIGN, (tb // ROW_ALIGN) * ROW_ALIGN)
    rb = _round_up(batch, ROW_ALIGN)
    if rb > ROW_ALIGN:
        tb_eff = min(tb, _round_up(pl.cdiv(rb, 2), ROW_ALIGN))
    else:
        tb_eff = ROW_ALIGN
    padded_batch = _round_up(rb, tb_eff)

    if padded_batch != batch:
        x_p = jnp.zeros((padded_batch, state_dim), x.dtype).at[:batch].set(x)
    else:
        x_p = x

    grid = (padded_batch // tb_eff,)

    out = pl.pallas_call(
        actor_kernel,
        # bf16 output: halves the dominant (128-lane padded) HBM writeback.
        out_shape=jax.ShapeDtypeStruct((padded_batch, N_PAD), jnp.bfloat16),
        grid_spec=pltpu.PrefetchScalarGridSpec(
            num_scalar_prefetch=0,
            grid=grid,
            in_specs=[
                # x streams with the batch grid (double-buffered by Pallas).
                pl.BlockSpec((tb_eff, state_dim), lambda i: (i, 0)),
                # Weights / biases: constant index_map -> resident in VMEM.
                pl.BlockSpec((state_dim, hidden), lambda i: (0, 0)),
                pl.BlockSpec((1, hidden), lambda i: (0, 0)),
                pl.BlockSpec((hidden, hidden), lambda i: (0, 0)),
                pl.BlockSpec((1, hidden), lambda i: (0, 0)),
                pl.BlockSpec((hidden, N_PAD), lambda i: (0, 0)),
                pl.BlockSpec((1, N_PAD), lambda i: (0, 0)),
            ],
            out_specs=pl.BlockSpec((tb_eff, N_PAD), lambda i: (i, 0)),
        ),
        compiler_params=pltpu.CompilerParams(
            dimension_semantics=("parallel",),      # shard batch over TCs (v7x)
            vmem_limit_bytes=32 * 1024 * 1024,      # ample on all generations
        ),
    )(x_p, w1b, b1, w2b, b2, w3b, b3p)

    # Tiny slice + cast back to f32 (kernel-side bytes stay bf16).
    return out[:batch, :action_dim].astype(jnp.float32)


def actor_reference(x, params):
    """Pure-JAX f32 reference (eval-mode dropout = identity)."""
    w1, b1, w2, b2, w3, b3 = params
    h1 = jnp.maximum(x @ w1 + b1, 0.0)
    h2 = jnp.maximum(h1 @ w2 + b2, 0.0)
    logits = h2 @ w3 + b3
    return jax.nn.softmax(logits, axis=-1)


def init_params(key, state_dim, action_dim, hidden=HIDDEN):
    """Deterministic synthetic init (uniform, PyTorch-Linear-like fan-in scale)."""
    ks = jax.random.split(key, 6)

    def lin(kw, kb, fan_in, fan_out):
        bound = 1.0 / jnp.sqrt(jnp.float32(fan_in))
        w = jax.random.uniform(kw, (fan_in, fan_out), jnp.float32, -bound, bound)
        b = jax.random.uniform(kb, (1, fan_out), jnp.float32, -bound, bound)
        return w, b

    w1, b1 = lin(ks[0], ks[1], state_dim, hidden)
    w2, b2 = lin(ks[2], ks[3], hidden, hidden)
    w3, b3 = lin(ks[4], ks[5], hidden, action_dim)
    return (w1, b1, w2, b2, w3, b3)


if __name__ == "__main__":
    key = jax.random.PRNGKey(0)
    k_x, k_x2, k_p = jax.random.split(key, 3)

    state_dim = 32
    action_dim = 8
    params = init_params(k_p, state_dim, action_dim)
    prepared = prepare_params(params)            # hoisted one-time prep

    # Case 1: tiny batch (single grid step, batch padded to the row tile).
    batch = 2
    x = jax.random.normal(k_x, (batch, state_dim), jnp.float32)
    probs = jax.block_until_ready(actor_forward(x, prepared, action_dim))
    ref = actor_reference(x, params)

    assert probs.shape == (batch, action_dim)
    assert probs.dtype == jnp.float32
    # bf16 output rounding + bf16 MXU matmuls -> modest tolerances.
    assert bool(jnp.all(jnp.abs(jnp.sum(probs, axis=-1) - 1.0) < 1e-2))
    assert bool(jnp.max(jnp.abs(probs - ref)) < 5e-2)

    # Case 2: exercises the >=2-step batch grid + batch-padding path.
    batch2 = 20
    x2 = jax.random.normal(k_x2, (batch2, state_dim), jnp.float32)
    probs2 = jax.block_until_ready(actor_forward(x2, prepared, action_dim))
    ref2 = actor_reference(x2, params)

    assert probs2.shape == (batch2, action_dim)
    assert bool(jnp.all(jnp.abs(jnp.sum(probs2, axis=-1) - 1.0) < 1e-2))
    assert bool(jnp.max(jnp.abs(probs2 - ref2)) < 5e-2)

    print("KERNEL_OK")
</pallas_src>

<mosaic_0001>
module attributes {stable_mosaic.version = 11 : i64} {
  func.func @actor_kernel(%arg0: i32, %arg1: memref<16x32xf32, #tpu.memory_space<vmem>>, %arg2: memref<32x128xbf16, #tpu.memory_space<vmem>>, %arg3: memref<1x128xf32, #tpu.memory_space<vmem>>, %arg4: memref<128x128xbf16, #tpu.memory_space<vmem>>, %arg5: memref<1x128xf32, #tpu.memory_space<vmem>>, %arg6: memref<128x128xbf16, #tpu.memory_space<vmem>>, %arg7: memref<1x128xf32, #tpu.memory_space<vmem>>, %arg8: memref<16x128xbf16, #tpu.memory_space<vmem>>) attributes {dimension_semantics = [#tpu.dimension_semantics<parallel>], iteration_bounds = array<i64: 1>, scalar_prefetch = 0 : i64, scratch_operands = 0 : i64, tpu.core_type = #tpu.core_type<tc>, window_params = [{transform_indices = @transform_0, window_bounds = array<i64: 16, 32>}, {pipeline_mode = #tpu.pipeline_mode<synchronous>, transform_indices = @transform_1, window_bounds = array<i64: 32, 128>}, {pipeline_mode = #tpu.pipeline_mode<synchronous>, transform_indices = @transform_2, window_bounds = array<i64: 1, 128>}, {pipeline_mode = #tpu.pipeline_mode<synchronous>, transform_indices = @transform_3, window_bounds = array<i64: 128, 128>}, {pipeline_mode = #tpu.pipeline_mode<synchronous>, transform_indices = @transform_4, window_bounds = array<i64: 1, 128>}, {pipeline_mode = #tpu.pipeline_mode<synchronous>, transform_indices = @transform_5, window_bounds = array<i64: 128, 128>}, {pipeline_mode = #tpu.pipeline_mode<synchronous>, transform_indices = @transform_6, window_bounds = array<i64: 1, 128>}, {transform_indices = @transform_7, window_bounds = array<i64: 16, 128>}]} {
    %c0 = arith.constant 0 : index
    %c0_0 = arith.constant 0 : index
    %0 = vector.load %arg1[%c0, %c0_0] : memref<16x32xf32, #tpu.memory_space<vmem>>, vector<16x32xf32>
    %1 = arith.truncf %0 : vector<16x32xf32> to vector<16x32xbf16>
    %c0_1 = arith.constant 0 : index
    %c0_2 = arith.constant 0 : index
    %2 = vector.load %arg2[%c0_1, %c0_2] : memref<32x128xbf16, #tpu.memory_space<vmem>>, vector<32x128xbf16>
    %cst = arith.constant dense<0.000000e+00> : vector<16x128xf32>
    %3 = tpu.matmul %1, %2, %cst {dimension_numbers = #tpu.dot_dimension_numbers<[1], [0], [0], [1], [0, 0, 1, 1], [], []>} : vector<16x32xbf16>, vector<32x128xbf16>, vector<16x128xf32> -> vector<16x128xf32>
    %c0_3 = arith.constant 0 : index
    %c0_4 = arith.constant 0 : index
    %4 = vector.load %arg3[%c0_3, %c0_4] : memref<1x128xf32, #tpu.memory_space<vmem>>, vector<1x128xf32>
    %5 = vector.broadcast %4 : vector<1x128xf32> to vector<16x128xf32>
    %6 = arith.addf %3, %5 : vector<16x128xf32>
    %cst_5 = arith.constant 0.000000e+00 : f32
    %7 = vector.broadcast %cst_5 : f32 to vector<16x128xf32>
    %8 = arith.maximumf %6, %7 : vector<16x128xf32>
    %9 = arith.truncf %8 : vector<16x128xf32> to vector<16x128xbf16>
    %c0_6 = arith.constant 0 : index
    %c0_7 = arith.constant 0 : index
    %10 = vector.load %arg4[%c0_6, %c0_7] : memref<128x128xbf16, #tpu.memory_space<vmem>>, vector<128x128xbf16>
    %cst_8 = arith.constant dense<0.000000e+00> : vector<16x128xf32>
    %11 = tpu.matmul %9, %10, %cst_8 {dimension_numbers = #tpu.dot_dimension_numbers<[1], [0], [0], [1], [0, 0, 1, 1], [], []>} : vector<16x128xbf16>, vector<128x128xbf16>, vector<16x128xf32> -> vector<16x128xf32>
    %c0_9 = arith.constant 0 : index
    %c0_10 = arith.constant 0 : index
    %12 = vector.load %arg5[%c0_9, %c0_10] : memref<1x128xf32, #tpu.memory_space<vmem>>, vector<1x128xf32>
    %13 = vector.broadcast %12 : vector<1x128xf32> to vector<16x128xf32>
    %14 = arith.addf %11, %13 : vector<16x128xf32>
    %cst_11 = arith.constant 0.000000e+00 : f32
    %15 = vector.broadcast %cst_11 : f32 to vector<16x128xf32>
    %16 = arith.maximumf %14, %15 : vector<16x128xf32>
    %17 = arith.truncf %16 : vector<16x128xf32> to vector<16x128xbf16>
    %c0_12 = arith.constant 0 : index
    %c0_13 = arith.constant 0 : index
    %18 = vector.load %arg6[%c0_12, %c0_13] : memref<128x128xbf16, #tpu.memory_space<vmem>>, vector<128x128xbf16>
    %cst_14 = arith.constant dense<0.000000e+00> : vector<16x128xf32>
    %19 = tpu.matmul %17, %18, %cst_14 {dimension_numbers = #tpu.dot_dimension_numbers<[1], [0], [0], [1], [0, 0, 1, 1], [], []>} : vector<16x128xbf16>, vector<128x128xbf16>, vector<16x128xf32> -> vector<16x128xf32>
    %c0_15 = arith.constant 0 : index
    %c0_16 = arith.constant 0 : index
    %20 = vector.load %arg7[%c0_15, %c0_16] : memref<1x128xf32, #tpu.memory_space<vmem>>, vector<1x128xf32>
    %21 = vector.broadcast %20 : vector<1x128xf32> to vector<16x128xf32>
    %22 = arith.addf %19, %21 : vector<16x128xf32>
    %cst_17 = arith.constant dense<0xFF800000> : vector<16xf32>
    %23 = vector.multi_reduction <maximumf>, %22, %cst_17 [1] : vector<16x128xf32> to vector<16xf32>
    %24 = vector.shape_cast %23 : vector<16xf32> to vector<16x1xf32>
    %25 = vector.broadcast %24 : vector<16x1xf32> to vector<16x128xf32>
    %26 = arith.subf %22, %25 : vector<16x128xf32>
    %27 = math.exp %26 : vector<16x128xf32>
    %cst_18 = arith.constant dense<0.000000e+00> : vector<16xf32>
    %28 = vector.multi_reduction <add>, %27, %cst_18 [1] : vector<16x128xf32> to vector<16xf32>
    %29 = vector.shape_cast %28 : vector<16xf32> to vector<16x1xf32>
    %30 = vector.broadcast %29 : vector<16x1xf32> to vector<16x128xf32>
    %31 = arith.divf %27, %30 : vector<16x128xf32>
    %32 = arith.truncf %31 : vector<16x128xf32> to vector<16x128xbf16>
    %c0_19 = arith.constant 0 : index
    %c0_20 = arith.constant 0 : index
    %33 = vector.load %arg8[%c0_19, %c0_20] : memref<16x128xbf16, #tpu.memory_space<vmem>>, vector<16x128xbf16>
    tpu.vector_store %arg8[%c0_19, %c0_20], %32 {strides = array<i32>} : memref<16x128xbf16, #tpu.memory_space<vmem>>, vector<16x128xbf16>,
    return
  }
  func.func @transform_0(%arg0: i32) -> (i32, i32) {
    %c0_i32 = arith.constant 0 : i32
    %c0_i32_0 = arith.constant 0 : i32
    return %arg0, %c0_i32 : i32, i32
  }
  func.func @transform_1(%arg0: i32) -> (i32, i32) {
    %c0_i32 = arith.constant 0 : i32
    %c0_i32_0 = arith.constant 0 : i32
    %c0_i32_1 = arith.constant 0 : i32
    return %c0_i32, %c0_i32_0 : i32, i32
  }
  func.func @transform_2(%arg0: i32) -> (i32, i32) {
    %c0_i32 = arith.constant 0 : i32
    %c0_i32_0 = arith.constant 0 : i32
    %c0_i32_1 = arith.constant 0 : i32
    return %c0_i32, %c0_i32_0 : i32, i32
  }
  func.func @transform_3(%arg0: i32) -> (i32, i32) {
    %c0_i32 = arith.constant 0 : i32
    %c0_i32_0 = arith.constant 0 : i32
    %c0_i32_1 = arith.constant 0 : i32
    return %c0_i32, %c0_i32_0 : i32, i32
  }
  func.func @transform_4(%arg0: i32) -> (i32, i32) {
    %c0_i32 = arith.constant 0 : i32
    %c0_i32_0 = arith.constant 0 : i32
    %c0_i32_1 = arith.constant 0 : i32
    return %c0_i32, %c0_i32_0 : i32, i32
  }
  func.func @transform_5(%arg0: i32) -> (i32, i32) {
    %c0_i32 = arith.constant 0 : i32
    %c0_i32_0 = arith.constant 0 : i32
    %c0_i32_1 = arith.constant 0 : i32
    return %c0_i32, %c0_i32_0 : i32, i32
  }
  func.func @transform_6(%arg0: i32) -> (i32, i32) {
    %c0_i32 = arith.constant 0 : i32
    %c0_i32_0 = arith.constant 0 : i32
    %c0_i32_1 = arith.constant 0 : i32
    return %c0_i32, %c0_i32_0 : i32, i32
  }
  func.func @transform_7(%arg0: i32) -> (i32, i32) {
    %c0_i32 = arith.constant 0 : i32
    %c0_i32_0 = arith.constant 0 : i32
    return %arg0, %c0_i32 : i32, i32
  }
}

</mosaic_0001>

<bundles_post_ra>
// kernel: tpu_custom_call.1
= control target key start
LH: loop header
LB: loop body
LE: loop exit
PB: predicated region body
PF: predicated region fallthrough
CT: control target
= control target key end

     0   :  { %12 = vsyncpa [#allocation3], 0  ;;  %s849_s0 = inlined_call_operand.hbm [shape: f32[16,32], index: 0, kind: input, shape index: {}]   ;;  %s850_s1 = inlined_call_operand.hbm [shape: bf16[32,128], index: 1, kind: input, shape index: {}]   ;;  %s851_s2 = inlined_call_operand.vmem [shape: f32[1,128], index: 2, kind: input, shape index: {}]   ;;  %s852_s3 = inlined_call_operand.hbm [shape: bf16[128,128], index: 3, kind: input, shape index: {}]   ;;  %s853_s4 = inlined_call_operand.vmem [shape: f32[1,128], index: 4, kind: input, shape index: {}]   ;;  %s854_s5 = inlined_call_operand.hbm [shape: bf16[128,128], index: 5, kind: input, shape index: {}]   ;;  %s855_s6 = inlined_call_operand.vmem [shape: f32[1,128], index: 6, kind: input, shape index: {}]   ;;  %s856_s7 = inlined_call_operand.hbm [shape: bf16[16,128], index: 7, kind: output, shape index: {}]  }
   0x1   :  { %13 = vsyncpa [#allocation6], 0 }
   0x2   :  { %14 = vsyncpa [#allocation9], 0 }
   0x3   :  { %15 = vsyncpa [#allocation4], 0  ;;  %s686_s24 = smov [#allocation5]   ;;  %s568_s28 = scalar_lea.hbm %s850_s1, 256 }
   0x4   :  { %s33_s25 = sshll.u32 %s686_s24, 4  ;;  %p569_p0 = scmp.ne.s32.totalorder %s850_s1, %s568_s28  ;;  %s34_s25 = int_to_ptr.vmem [resolvable:$true] %s33_s25 }
   0x5   :  { %p572_p1 = scmp.lt.u32.totalorder %s568_s28, %s850_s1 }
   0x7   :  { %p574_p2 = pnand %p572_p1, %p569_p0 }
   0x9   :  { %577 = shalt.err (!%p574_p2)
}
   0xa   :  { %s578_s10 = scalar_lea.vmem %s34_s25, 256  ;;  %p583_p4 = scmp.lt.s32.totalorder %s34_s25, %s34_s25 }
   0xb   :  { %p579_p3 = scmp.ne.s32.totalorder %s34_s25, %s578_s10  ;;  %p584_p5 = scmp.lt.s32.totalorder %s578_s10, %s578_s10 }
   0xd   :  { %p585_p6 = por %p584_p5, %p583_p4 }
   0xf   :  { %p586_p7 = pnand %p585_p6, %p579_p3 }
  0x11   :  { %589 = shalt.err (!%p586_p7)
}
  0x12   :  { %s687_s11 = smov 64   ;;  %s688_s12 = smov 4  }
  0x13   :  { %39 = dma.hbm_to_vmem [thread:$0]  %s850_s1, 256, %s34_s25, [#allocation6], %s687_s11, %s687_s11, %s688_s12  }
  0x14   :  { %s689_s15 = smov [#allocation2]   ;;  %s590_s19 = scalar_lea.hbm %s849_s0, 256 }
  0x15   :  { %s21_s16 = sshll.u32 %s689_s15, 4  ;;  %p591_p8 = scmp.ne.s32.totalorder %s849_s0, %s590_s19  ;;  %s22_s16 = int_to_ptr.vmem [resolvable:$true] %s21_s16 }
  0x16   :  { %p594_p9 = scmp.lt.u32.totalorder %s590_s19, %s849_s0 }
  0x18   :  { %p596_p10 = pnand %p594_p9, %p591_p8 }
  0x1a   :  { %599 = shalt.err (!%p596_p10)
}
  0x1b   :  { %s600_s24 = scalar_lea.vmem %s22_s16, 256  ;;  %p605_p12 = scmp.lt.s32.totalorder %s22_s16, %s22_s16 }
  0x1c   :  { %p601_p11 = scmp.ne.s32.totalorder %s22_s16, %s600_s24  ;;  %p606_p13 = scmp.lt.s32.totalorder %s600_s24, %s600_s24 }
  0x1e   :  { %p607_p0 = por %p606_p13, %p605_p12 }
  0x20   :  { %p608_p1 = pnand %p607_p0, %p601_p11 }
  0x22   :  { %611 = shalt.err (!%p608_p1)
}
  0x23   :  { %s690_s1 = smov 128   ;;  %s691_s25 = smov 8  }
  0x24   :  { %27 = dma.hbm_to_vmem [thread:$0]  %s849_s0, 256, %s22_s16, [#allocation3], %s690_s1, %s690_s1, %s691_s25  }
  0x25   :  { %s692_s28 = smov [#allocation7]   ;;  %s693_s30 = smov [#allocation8]  }
  0x26   :  { %s47_s29 = sshll.u32 %s692_s28, 4  ;;  %s61_s8 = sshll.u32 %s693_s30, 4  ;;  %s48_s29 = int_to_ptr.vmem [resolvable:$true] %s47_s29  ;;  %s764_s8 = int_to_ptr.vmem [resolvable:$true] %s61_s8 }
  0x27   :  { %s612_s13 = scalar_lea.hbm %s852_s3, 1024 }
  0x28   :  { %p613_p2 = scmp.ne.s32.totalorder %s852_s3, %s612_s13  ;;  %p616_p3 = scmp.lt.u32.totalorder %s612_s13, %s852_s3 }
  0x2a   :  { %p618_p4 = pnand %p616_p3, %p613_p2 }
  0x2c   :  { %621 = shalt.err (!%p618_p4)
}
  0x2d   :  { %s622_s0 = scalar_lea.vmem %s48_s29, 1024  ;;  %p627_p6 = scmp.lt.s32.totalorder %s48_s29, %s48_s29 }
  0x2e   :  { %p623_p5 = scmp.ne.s32.totalorder %s48_s29, %s622_s0  ;;  %p628_p7 = scmp.lt.s32.totalorder %s622_s0, %s622_s0 }
  0x30   :  { %p629_p8 = por %p628_p7, %p627_p6 }
  0x32   :  { %p630_p9 = pnand %p629_p8, %p623_p5 }
  0x34   :  { %633 = shalt.err (!%p630_p9)
}
  0x35   :  { %53 = dma.hbm_to_vmem [thread:$0]  %s852_s3, 1024, %s48_s29, [#allocation6], %s687_s11, %s687_s11, %s688_s12  }
  0x36   :  { %s634_s22 = scalar_lea.hbm %s854_s5, 1024 }
  0x37   :  { %p635_p10 = scmp.ne.s32.totalorder %s854_s5, %s634_s22  ;;  %p638_p11 = scmp.lt.u32.totalorder %s634_s22, %s854_s5 }
  0x39   :  { %p640_p12 = pnand %p638_p11, %p635_p10 }
  0x3b   :  { %643 = shalt.err (!%p640_p12)
}
  0x3c   :  { %s644_s26 = scalar_lea.vmem %s764_s8, 1024  ;;  %p649_p0 = scmp.lt.s32.totalorder %s764_s8, %s764_s8 }
  0x3d   :  { %p645_p13 = scmp.ne.s32.totalorder %s764_s8, %s644_s26  ;;  %p650_p1 = scmp.lt.s32.totalorder %s644_s26, %s644_s26 }
  0x3f   :  { %p651_p2 = por %p650_p1, %p649_p0 }
  0x41   :  { %p652_p3 = pnand %p651_p2, %p645_p13 }
  0x43   :  { %655 = shalt.err (!%p652_p3)
}
  0x44   :  { %67 = dma.hbm_to_vmem [thread:$0]  %s854_s5, 1024, %s764_s8, [#allocation9], %s687_s11, %s687_s11, %s688_s12  }
  0x45   :  { %678 = dma.done.wait [#allocation3], 256  }
  0x46   :  { %679 = vsyncadd [#allocation3], 4294967040 }
  0x47   :  { %680 = dma.done.wait [#allocation6], 1280  }
  0x48   :  { %681 = vsyncadd [#allocation6], 4294966016 }
  0x49   :  { %682 = dma.done.wait [#allocation9], 1024  }
  0x4a   :  { %683 = vsyncadd [#allocation9], 4294966272  ;;  %v694_v0 = vmov 0.0   ;;  %vm695_vm0 = vmmov 0   ;;  %v542_v1 = vld [vmem:[#allocation5] sm:$0xff]   ;;  %v543_v2 = vld [vmem:[#allocation5 + $0x8] sm:$0xff]  }
  0x4b   :  { %483 = vmatprep.subr.bf16.mxu0 %v694_v0  ;;  %487 = vmatprep.mubr.msk.bf16.mxu0 %vm695_vm0, %v694_v0  ;;  %v83_v3 = vld [vmem:[#allocation2] sm:$0xff]  ;;  %v84_v4 = vld [vmem:[#allocation2 + $0x8] sm:$0xff]  ;;  %vm109_vm1 = vcmask 261120   ;;  %v546_v8 = vld [vmem:[#allocation7 + $0x10] sm:$0xff]  }
  0x4c   :  { %491 = vmatprep.subr.bf16.mxu1 %v694_v0  ;;  %507 = vmatprep.mubr.msk.bf16.mxu1 %vm695_vm0, %v694_v0  ;;  %v544_v5 = vld [vmem:[#allocation7] sm:$0xff]   ;;  %v85_v6 = vpack.c.bf16 %v84_v4, %v83_v3  ;;  %v545_v7 = vld [vmem:[#allocation7 + $0x8] sm:$0xff]   ;;  %v547_v9 = vld [vmem:[#allocation7 + $0x18] sm:$0xff]  }
  0x4d   :  { %484 = vmatpush3.bf16.msra.mxu0 %v542_v1  ;;  %492 = vmatpush3.bf16.msra.mxu1 %v544_v5  ;;  %v548_v10 = vld [vmem:[#allocation7 + $0x20] sm:$0xff]   ;;  %v549_v11 = vld [vmem:[#allocation7 + $0x28] sm:$0xff]   ;;  %v550_v12 = vld [vmem:[#allocation7 + $0x30] sm:$0xff]  }
  0x4e   :  { %485 = vmatprep.subr.bf16.mxu0 %v694_v0  ;;  %493 = vmatprep.subr.bf16.mxu1 %v694_v0  ;;  %v551_v13 = vld [vmem:[#allocation7 + $0x38] sm:$0xff]   ;;  %v552_v14 = vld [vmem:[#allocation8] sm:$0xff]   ;;  %v553_v15 = vld [vmem:[#allocation8 + $0x8] sm:$0xff]  }
  0x4f   :  { %v554_v16 = vld [vmem:[#allocation8 + $0x10] sm:$0xff]   ;;  %v555_v17 = vld [vmem:[#allocation8 + $0x18] sm:$0xff]   ;;  %v556_v18 = vld [vmem:[#allocation8 + $0x20] sm:$0xff]  }
  0x50   :  { %v557_v19 = vld [vmem:[#allocation8 + $0x28] sm:$0xff]   ;;  %v431_v20 = vld [vmem:[%s851_s2] ss:$0 sm:$0xff]  ;;  %v558_v30 = vld [vmem:[#allocation8 + $0x30] sm:$0xff]  }
  0x51   :  { %486 = vmatpush3.bf16.msra.mxu0 %v543_v2  ;;  %494 = vmatpush3.bf16.msra.mxu1 %v545_v7  ;;  %v559_v31 = vld [vmem:[#allocation8 + $0x38] sm:$0xff]   ;;  %v435_v32 = vld [vmem:[%s853_s4] ss:$0 sm:$0xff]  ;;  %s696_s4 = smov [#allocation10]  }
  0x52   :  { %511 = vmatprep.subr.bf16.mxu0 %v694_v0  ;;  %495 = vmatprep.subr.bf16.mxu1 %v694_v0  ;;  %v444_v42 = vld [vmem:[%s855_s6] ss:$0 sm:$0xff]  ;;  %s417_s6 = sshll.u32 %s696_s4, 4  ;;  %s418_s6 = int_to_ptr.vmem [resolvable:$true] %s417_s6 }
  0x53   :  { %s656_s9 = scalar_lea.vmem %s418_s6, 128  ;;  %p661_p5 = scmp.lt.s32.totalorder %s418_s6, %s418_s6 }
  0x54   :  { %488 = vmatmul.mubr.msk.bf16.vlgmr.msra.gmra.mrb[0].mxu0 %vm109_vm1, %v85_v6  ;;  %p657_p4 = scmp.ne.s32.totalorder %s418_s6, %s656_s9  ;;  %p662_p6 = scmp.lt.s32.totalorder %s656_s9, %s656_s9 }
  0x55   :  { %527 = vmatprep.mubr.msk.bf16.mxu0 %vm695_vm0, %v694_v0  ;;  %496 = vmatpush3.bf16.msra.mxu1 %v546_v8 }
  0x56   :  { %497 = vmatprep.subr.bf16.mxu1 %v694_v0  ;;  %512 = vmatpush3.bf16.msra.mxu0 %v552_v14  ;;  %p663_p7 = por %p662_p6, %p661_p5 }
  0x57   :  { %513 = vmatprep.subr.bf16.mxu0 %v694_v0 }
  0x58   :  { %p664_p8 = pnand %p663_p7, %p657_p4 }
  0x59   :  { %498 = vmatpush3.bf16.msra.mxu1 %v547_v9 }
  0x5a   :  { %499 = vmatprep.subr.bf16.mxu1 %v694_v0  ;;  %514 = vmatpush3.bf16.msra.mxu0 %v553_v15 }
  0x5b   :  { %515 = vmatprep.subr.bf16.mxu0 %v694_v0 }
  0x5d   :  { %500 = vmatpush3.bf16.msra.mxu1 %v548_v10 }
  0x5e   :  { %501 = vmatprep.subr.bf16.mxu1 %v694_v0  ;;  %516 = vmatpush3.bf16.msra.mxu0 %v554_v16 }
  0x5f   :  { %517 = vmatprep.subr.bf16.mxu0 %v694_v0 }
  0x61   :  { %502 = vmatpush3.bf16.msra.mxu1 %v549_v11 }
  0x62   :  { %503 = vmatprep.subr.bf16.mxu1 %v694_v0  ;;  %518 = vmatpush3.bf16.msra.mxu0 %v555_v17 }
  0x63   :  { %519 = vmatprep.subr.bf16.mxu0 %v694_v0 }
  0x65   :  { %504 = vmatpush3.bf16.msra.mxu1 %v550_v12 }
  0x66   :  { %505 = vmatprep.subr.bf16.mxu1 %v694_v0  ;;  %520 = vmatpush3.bf16.msra.mxu0 %v556_v18 }
  0x67   :  { %521 = vmatprep.subr.bf16.mxu0 %v694_v0 }
  0x69   :  { %506 = vmatpush3.bf16.msra.mxu1 %v551_v13 }
  0x6a   :  { %522 = vmatpush3.bf16.msra.mxu0 %v557_v19 }
  0x6b   :  { %523 = vmatprep.subr.bf16.mxu0 %v694_v0 }
  0x6e   :  { %524 = vmatpush3.bf16.msra.mxu0 %v558_v30 }
  0x6f   :  { %525 = vmatprep.subr.bf16.mxu0 %v694_v0 }
  0x72   :  { %526 = vmatpush3.bf16.msra.mxu0 %v559_v31 }
 0x127   :  { %v147_v21 = vpop.f32.mrb[0].mxu0 }
 0x128   :  { %v148_v22 = vadd.f32 %v431_v20, %v147_v21  ;;  %v489_v23 = vpop.f32.mrb[1].mxu0 }
 0x129   :  { %v150_v24 = vpop.f32.mrb[2].mxu0 }
 0x12a   :  { %v151_v25 = vadd.f32 %v431_v20, %v150_v24  ;;  %v490_v26 = vpop.f32.mrb[3].mxu0  ;;  %v154_v27 = vmax.f32 %v148_v22, 0.0 }
 0x12c   :  { %v155_v28 = vmax.f32 %v151_v25, 0.0 }
 0x12e   :  { %v156_v29 = vpack.c.bf16 %v155_v28, %v154_v27 }
 0x130   :  { %508 = vmatmul.mubr.bf16.vlgmr.msra.gmra.mrb[0].mxu1 %v156_v29 }
 0x203   :  { %v262_v33 = vpop.f32.mrb[0].mxu1 }
 0x204   :  { %v263_v34 = vadd.f32 %v435_v32, %v262_v33  ;;  %v509_v35 = vpop.f32.mrb[1].mxu1 }
 0x205   :  { %v265_v36 = vpop.f32.mrb[2].mxu1 }
 0x206   :  { %v266_v37 = vadd.f32 %v435_v32, %v265_v36  ;;  %v510_v38 = vpop.f32.mrb[3].mxu1  ;;  %v269_v39 = vmax.f32 %v263_v34, 0.0 }
 0x208   :  { %v270_v40 = vmax.f32 %v266_v37, 0.0 }
 0x20a   :  { %v271_v41 = vpack.c.bf16 %v270_v40, %v269_v39 }
 0x20c   :  { %528 = vmatmul.mubr.bf16.vlgmr.msra.gmra.mrb[4].mxu0 %v271_v41 }
 0x2df   :  { %v377_v43 = vpop.f32.mrb[4].mxu0 }
 0x2e0   :  { %v378_v44 = vadd.f32 %v444_v42, %v377_v43  ;;  %v529_v45 = vpop.f32.mrb[5].mxu0 }
 0x2e1   :  { %v380_v46 = vpop.f32.mrb[6].mxu0 }
 0x2e2   :  { %384 = vmax.xlane.f32.xlu0 %v378_v44  ;;  %v530_v47 = vpop.f32.mrb[7].mxu0  ;;  %v381_v48 = vadd.f32 %v444_v42, %v380_v46 }
 0x2e6   :  { %386 = vmax.xlane.f32.xlu0 %v381_v48 }
 0x36f   :  { %v385_v49 = vpop.xlane.xlu0 %384 }
 0x370   :  { %v388_v50 = vsub.f32 %v378_v44, %v385_v49 }
 0x372   :  { %v390_v51 = vmul.f32 1.442695, %v388_v50 }
 0x373   :  { %v387_v52 = vpop.xlane.xlu0 %386 }
 0x374   :  { %560 = vpow2.f32 %v390_v51  ;;  %v389_v53 = vsub.f32 %v381_v48, %v387_v52 }
 0x376   :  { %v392_v54 = vmul.f32 1.442695, %v389_v53 }
 0x378   :  { %562 = vpow2.f32 %v392_v54 }
 0x37e   :  { %v561_v55 = vpop.eup %560 }
 0x37f   :  { %394 = vadd.xlane.f32.xlu1 %v561_v55 }
 0x382   :  { %v563_v56 = vpop.eup %562 }
 0x383   :  { %396 = vadd.xlane.f32.xlu1 %v563_v56 }
 0x40c   :  { %v395_v57 = vpop.xlane.xlu1 %394 }
 0x40d   :  { %564 = vrcp.f32 %v395_v57 }
 0x410   :  { %v397_v58 = vpop.xlane.xlu1 %396 }
 0x411   :  { %566 = vrcp.f32 %v397_v58 }
 0x417   :  { %v565_v59 = vpop.eup %564 }
 0x418   :  { %v399_v61 = vmul.f32 %v565_v59, %v561_v55 }
 0x41b   :  { %v567_v60 = vpop.eup %566 }
 0x41c   :  { %v401_v62 = vmul.f32 %v567_v60, %v563_v56 }
 0x41e   :  { %v460_v63 = vpack.c.bf16 %v401_v62, %v399_v61 }
 0x420   :  { %461 = vst [vmem:[#allocation10] sm:$0xff] %v460_v63  }
 0x421   :  { %667 = shalt.err (!%p664_p8)
}
 0x422   :  { %s668_s14 = scalar_lea.hbm %s856_s7, 128 }
 0x423   :  { %p669_p9 = scmp.ne.s32.totalorder %s856_s7, %s668_s14  ;;  %p672_p10 = scmp.lt.u32.totalorder %s668_s14, %s856_s7 }
 0x425   :  { %p674_p11 = pnand %p672_p10, %p669_p9 }
 0x427   :  { %677 = shalt.err (!%p674_p11)
}
 0x428   :  { %423 = dma.vmem_to_hbm [thread:$0]  %s418_s6, 128, %s856_s7, [#allocation4], %s687_s11, %s687_s11, %s688_s12  }
 0x429   :  { %684 = dma.done.wait [#allocation4], 128  }
 0x42a   :  { %685 = vsyncadd [#allocation4], 4294967168 }
 0x42b   :  { %427 = vsyncpa [#allocation3], 1 }
 0x42c   :  { %428 = vsyncpa [#allocation6], 1 }
 0x42d   :  { %429 = vsyncpa [#allocation9], 1 }
 0x42e   :  { %430 = vsyncpa [#allocation4], 1 }

</bundles_post_ra>
